<compile_context>
chip_gen: v6e
topology: v6e:2x2x1
jax: 0.10.0
libtpu: 0.0.40
codegen_flags: <defaults>
</compile_context>

<pallas_src>
import functools

import jax
import jax.numpy as jnp
from jax.experimental import pallas as pl
from jax.experimental.pallas import tpu as pltpu


def _focal_loss_tile(x, t, *, num_classes, fold, alpha, gamma):
    """Elementwise focal loss for one lane-dense packed tile.

    x: (T, L) f32 log-probabilities, L = fold * num_classes
    t: (T, fold) int32 class ids (one per packed sub-row)
    returns: (T, L) f32 per-element loss
    """
    tile_rows, lanes = x.shape

    # --- one-hot membership mask, built in-kernel (no gather / repeat) -------
    # expand[j, l] = 1.0 iff lane l belongs to sub-row j (i.e. l // C == j),
    # built from iotas + compares (no integer div/mod needed).
    r_io = jax.lax.broadcasted_iota(jnp.int32, (fold, lanes), 0)
    c_io = jax.lax.broadcasted_iota(jnp.int32, (fold, lanes), 1)
    expand = ((c_io >= r_io * num_classes) &
              (c_io < (r_io + 1) * num_classes)).astype(jnp.float32)
    # Hit lane of sub-row j is j*C + target[j]; one (T, fold) x (fold, L) MXU
    # dot broadcasts it across that sub-row's lanes (values <= 127 -> exact).
    sub_io = jax.lax.broadcasted_iota(jnp.int32, (tile_rows, fold), 1)
    hit_lane = jnp.dot((t + sub_io * num_classes).astype(jnp.float32), expand,
                       preferred_element_type=jnp.float32)            # (T, L)
    lane_io = jax.lax.broadcasted_iota(
        jnp.int32, (tile_rows, lanes), 1).astype(jnp.float32)
    is_target = lane_io == hit_lane                                    # (T, L)

    # --- focal loss (matches the PyTorch multiclass branch) ------------------
    probs = jnp.exp(x)                           # log-softmax -> probabilities
    pt = jnp.where(is_target, probs, 1.0 - probs)
    one_minus_pt = 1.0 - pt

    g = float(gamma)
    gi = int(g)
    if g == gi and 0 <= gi <= 4:
        # Integer gamma (default 2.0): repeated VPU multiplies instead of
        # jnp.power (which adds an extra exp+log on the single-slot EUP —
        # the binding unit of this kernel).
        fw = jnp.ones_like(one_minus_pt) if gi == 0 else one_minus_pt
        for _ in range(gi - 1):
            fw = fw * one_minus_pt
    else:
        # Clamp the base so non-integer gamma never sees a negative.
        fw = jnp.power(jnp.maximum(one_minus_pt, 0.0), g)

    return (alpha * fw) * (-jnp.log(jnp.maximum(pt, 1e-8)))


def _focal_partial_kernel(x_ref, t_ref, out_ref, **kw):
    """'mean'/'sum' path: (T, L) tile -> (1, L) per-lane partial sums.

    Sublane-direction adds only; cross-lane / cross-tile reduction is deferred
    to the wrapper epilogue (keeps every grid step independent -> parallel)."""
    loss = _focal_loss_tile(x_ref[...], t_ref[...], **kw)
    out_ref[...] = jnp.sum(loss, axis=0, keepdims=True)


def _focal_elementwise_kernel(x_ref, t_ref, out_ref, **kw):
    """'none' path: streaming elementwise loss, lane-dense unmasked stores."""
    out_ref[...] = _focal_loss_tile(x_ref[...], t_ref[...], **kw)


def _pick_tile_rows(rows, max_rows=2048):
    """Largest tile (<= max_rows packed rows) that divides `rows`, preferring
    a multiple of 8 so the sublane dim stays tile-aligned."""
    if rows <= max_rows:
        return rows
    for tile in range(max_rows - max_rows % 8, 0, -8):
        if rows % tile == 0:
            return tile
    return rows


def focal_loss(inputs, targets, *, alpha=1.0, gamma=2.0, reduction="mean"):
    """inputs: (N, C) float32 log-softmax outputs; targets: (N,) int class ids."""
    # TODO(synk): binary branch (C == 1, sigmoid inputs) of the PyTorch module
    # is not implemented in the kernel; this covers the multiclass branch.
    N, C = inputs.shape
    assert C > 1, "kernel implements the multiclass branch (C > 1)"

    # Lane-dense packing: fold `fold` rows of C classes into one 128-wide row.
    if 128 % C == 0 and N % (128 // C) == 0:
        fold = 128 // C
    else:
        fold = 1
    lanes = fold * C
    rows = N // fold

    x_packed = inputs.astype(jnp.float32).reshape(rows, lanes)
    t_packed = targets.astype(jnp.int32).reshape(rows, fold)

    tile_rows = _pick_tile_rows(rows)
    num_tiles = rows // tile_rows

    kw = dict(num_classes=C, fold=fold, alpha=float(alpha), gamma=float(gamma))

    if reduction == "none":
        kernel = functools.partial(_focal_elementwise_kernel, **kw)
        loss_packed = pl.pallas_call(
            kernel,
            out_shape=jax.ShapeDtypeStruct((rows, lanes), jnp.float32),
            grid_spec=pltpu.PrefetchScalarGridSpec(
                num_scalar_prefetch=0,
                grid=(num_tiles,),
                in_specs=[
                    pl.BlockSpec((tile_rows, lanes), lambda i: (i, 0)),
                    pl.BlockSpec((tile_rows, fold), lambda i: (i, 0)),
                ],
                out_specs=pl.BlockSpec((tile_rows, lanes), lambda i: (i, 0)),
            ),
            compiler_params=pltpu.CompilerParams(
                dimension_semantics=("parallel",)),
        )(x_packed, t_packed)
        return loss_packed.reshape(N, C)

    kernel = functools.partial(_focal_partial_kernel, **kw)
    partials = pl.pallas_call(
        kernel,
        out_shape=jax.ShapeDtypeStruct((num_tiles, lanes), jnp.float32),
        grid_spec=pltpu.PrefetchScalarGridSpec(
            num_scalar_prefetch=0,
            grid=(num_tiles,),
            in_specs=[
                pl.BlockSpec((tile_rows, lanes), lambda i: (i, 0)),
                pl.BlockSpec((tile_rows, fold), lambda i: (i, 0)),
            ],
            out_specs=pl.BlockSpec((1, lanes), lambda i: (i, 0)),
        ),
        # Independent per-tile partial outputs -> "parallel": on v7x the grid
        # shards across both TensorCores; no-op on v5e/v6e (1 TC).
        compiler_params=pltpu.CompilerParams(
            dimension_semantics=("parallel",)),
    )(x_packed, t_packed)

    total = jnp.sum(partials)
    if reduction == "mean":
        return total / jnp.float32(N * C)
    elif reduction == "sum":
        return total
    else:
        raise ValueError(f"unknown reduction: {reduction!r}")


def _reference_focal_loss(inputs, targets, alpha=1.0, gamma=2.0,
                          reduction="mean"):
    # Pure-JAX reference mirroring the PyTorch forward (multiclass branch).
    probs = jnp.exp(inputs)
    one_hot = jax.nn.one_hot(targets, inputs.shape[-1], dtype=inputs.dtype)
    pt = probs * one_hot + (1.0 - probs) * (1.0 - one_hot)
    fw = alpha * (1.0 - pt) ** gamma
    loss = fw * -jnp.log(jnp.maximum(pt, 1e-8))
    if reduction == "mean":
        return loss.mean()
    elif reduction == "sum":
        return loss.sum()
    return loss


if __name__ == "__main__":
    key = jax.random.PRNGKey(0)
    k1, k2 = jax.random.split(key)

    N, C = 128, 16  # batch of 128 samples, 16 classes
    logits = jax.random.normal(k1, (N, C), dtype=jnp.float32)
    inputs = jax.nn.log_softmax(logits, axis=-1)           # log-softmax inputs
    targets = jax.random.randint(k2, (N,), 0, C, dtype=jnp.int32)

    out_mean = jax.block_until_ready(
        focal_loss(inputs, targets, alpha=1.0, gamma=2.0, reduction="mean"))
    out_sum = jax.block_until_ready(
        focal_loss(inputs, targets, alpha=1.0, gamma=2.0, reduction="sum"))
    out_none = jax.block_until_ready(
        focal_loss(inputs, targets, alpha=1.0, gamma=2.0, reduction="none"))

    ref_mean = _reference_focal_loss(inputs, targets, reduction="mean")
    ref_sum = _reference_focal_loss(inputs, targets, reduction="sum")
    ref_none = _reference_focal_loss(inputs, targets, reduction="none")
    assert jnp.allclose(out_mean, ref_mean, rtol=1e-5, atol=1e-6), (out_mean, ref_mean)
    assert jnp.allclose(out_sum, ref_sum, rtol=1e-5, atol=1e-5), (out_sum, ref_sum)
    assert jnp.allclose(out_none, ref_none, rtol=1e-5, atol=1e-6)

    print("KERNEL_OK")
</pallas_src>

<mosaic_0001>
module attributes {stable_mosaic.version = 11 : i64} {
  func.func @_focal_partial_kernel(%arg0: i32, %arg1: memref<16x128xf32, #tpu.memory_space<vmem>>, %arg2: memref<16x8xi32, #tpu.memory_space<vmem>>, %arg3: memref<1x128xf32, #tpu.memory_space<vmem>>) attributes {dimension_semantics = [#tpu.dimension_semantics<parallel>], iteration_bounds = array<i64: 1>, scalar_prefetch = 0 : i64, scratch_operands = 0 : i64, tpu.core_type = #tpu.core_type<tc>, window_params = [{transform_indices = @transform_0, window_bounds = array<i64: 16, 128>}, {transform_indices = @transform_1, window_bounds = array<i64: 16, 8>}, {transform_indices = @transform_2, window_bounds = array<i64: 1, 128>}]} {
    %c0 = arith.constant 0 : index
    %c0_0 = arith.constant 0 : index
    %0 = vector.load %arg1[%c0, %c0_0] : memref<16x128xf32, #tpu.memory_space<vmem>>, vector<16x128xf32>
    %c0_1 = arith.constant 0 : index
    %c0_2 = arith.constant 0 : index
    %1 = vector.load %arg2[%c0_1, %c0_2] : memref<16x8xi32, #tpu.memory_space<vmem>>, vector<16x8xi32>
    %2 = tpu.iota {dimensions = array<i32: 0>} : vector<8x128xi32>
    %3 = tpu.iota {dimensions = array<i32: 1>} : vector<8x128xi32>
    %c16_i32 = arith.constant 16 : i32
    %4 = vector.broadcast %c16_i32 : i32 to vector<8x128xi32>
    %5 = arith.muli %2, %4 : vector<8x128xi32>
    %6 = arith.cmpi sge, %3, %5 : vector<8x128xi32>
    %c1_i32 = arith.constant 1 : i32
    %7 = vector.broadcast %c1_i32 : i32 to vector<8x128xi32>
    %8 = arith.addi %2, %7 : vector<8x128xi32>
    %c16_i32_3 = arith.constant 16 : i32
    %9 = vector.broadcast %c16_i32_3 : i32 to vector<8x128xi32>
    %10 = arith.muli %8, %9 : vector<8x128xi32>
    %11 = arith.cmpi slt, %3, %10 : vector<8x128xi32>
    %12 = arith.andi %6, %11 : vector<8x128xi1>
    %13 = arith.extui %12 : vector<8x128xi1> to vector<8x128xi32>
    %14 = arith.sitofp %13 : vector<8x128xi32> to vector<8x128xf32>
    %15 = tpu.iota {dimensions = array<i32: 1>} : vector<16x8xi32>
    %c16_i32_4 = arith.constant 16 : i32
    %16 = vector.broadcast %c16_i32_4 : i32 to vector<16x8xi32>
    %17 = arith.muli %15, %16 : vector<16x8xi32>
    %18 = arith.addi %1, %17 : vector<16x8xi32>
    %19 = arith.sitofp %18 : vector<16x8xi32> to vector<16x8xf32>
    %cst = arith.constant dense<0.000000e+00> : vector<16x128xf32>
    %20 = tpu.matmul %19, %14, %cst {dimension_numbers = #tpu.dot_dimension_numbers<[1], [0], [0], [1], [0, 0, 1, 1], [], []>} : vector<16x8xf32>, vector<8x128xf32>, vector<16x128xf32> -> vector<16x128xf32>
    %21 = tpu.iota {dimensions = array<i32: 1>} : vector<16x128xi32>
    %22 = arith.sitofp %21 : vector<16x128xi32> to vector<16x128xf32>
    %23 = arith.cmpf oeq, %22, %20 : vector<16x128xf32>
    %24 = math.exp %0 : vector<16x128xf32>
    %cst_5 = arith.constant 1.000000e+00 : f32
    %25 = vector.broadcast %cst_5 : f32 to vector<16x128xf32>
    %26 = arith.subf %25, %24 : vector<16x128xf32>
    %27 = arith.select %23, %24, %26 : vector<16x128xi1>, vector<16x128xf32>
    %cst_6 = arith.constant 1.000000e+00 : f32
    %28 = vector.broadcast %cst_6 : f32 to vector<16x128xf32>
    %29 = arith.subf %28, %27 : vector<16x128xf32>
    %30 = arith.mulf %29, %29 : vector<16x128xf32>
    %cst_7 = arith.constant 1.000000e+00 : f32
    %31 = vector.broadcast %cst_7 : f32 to vector<16x128xf32>
    %32 = arith.mulf %31, %30 : vector<16x128xf32>
    %cst_8 = arith.constant 9.99999993E-9 : f32
    %33 = vector.broadcast %cst_8 : f32 to vector<16x128xf32>
    %34 = arith.maximumf %27, %33 : vector<16x128xf32>
    %35 = math.log %34 : vector<16x128xf32>
    %cst_9 = arith.constant 0.000000e+00 : f32
    %36 = vector.broadcast %cst_9 : f32 to vector<16x128xf32>
    %37 = arith.subf %36, %35 : vector<16x128xf32>
    %38 = arith.mulf %32, %37 : vector<16x128xf32>
    %cst_10 = arith.constant dense<0.000000e+00> : vector<128xf32>
    %39 = vector.multi_reduction <add>, %38, %cst_10 [0] : vector<16x128xf32> to vector<128xf32>
    %40 = vector.shape_cast %39 : vector<128xf32> to vector<1x128xf32>
    %c0_11 = arith.constant 0 : index
    %c0_12 = arith.constant 0 : index
    %41 = vector.load %arg3[%c0_11, %c0_12] : memref<1x128xf32, #tpu.memory_space<vmem>>, vector<1x128xf32>
    tpu.vector_store %arg3[%c0_11, %c0_12], %40 {strides = array<i32>} : memref<1x128xf32, #tpu.memory_space<vmem>>, vector<1x128xf32>,
    return
  }
  func.func @transform_0(%arg0: i32) -> (i32, i32) {
    %c0_i32 = arith.constant 0 : i32
    %c0_i32_0 = arith.constant 0 : i32
    return %arg0, %c0_i32 : i32, i32
  }
  func.func @transform_1(%arg0: i32) -> (i32, i32) {
    %c0_i32 = arith.constant 0 : i32
    %c0_i32_0 = arith.constant 0 : i32
    return %arg0, %c0_i32 : i32, i32
  }
  func.func @transform_2(%arg0: i32) -> (i32, i32) {
    %c0_i32 = arith.constant 0 : i32
    %c0_i32_0 = arith.constant 0 : i32
    return %arg0, %c0_i32 : i32, i32
  }
}

</mosaic_0001>

<bundles_post_ra>
// kernel: tpu_custom_call.1
= control target key start
LH: loop header
LB: loop body
LE: loop exit
PB: predicated region body
PF: predicated region fallthrough
CT: control target
= control target key end

     0   :  { %v16_v0 = vlaneseq  ;;  %s238_s0 = inlined_call_operand.vmem [shape: f32[16,128], index: 0, kind: input, shape index: {}]   ;;  %s239_s1 = inlined_call_operand.vmem [shape: s32[16,8], index: 1, kind: input, shape index: {}]   ;;  %s240_s2 = inlined_call_operand.hbm [shape: f32[1,128], index: 2, kind: output, shape index: {}]  }
   0x1   :  { %7 = vsyncpa [#allocation3], 0  ;;  %v14_v3 = vld [vmem:[%s239_s1] sm:$0xff]  ;;  %v15_v4 = vld [vmem:[%s239_s1 + $0x8] sm:$0xff]  ;;  %vm33_vm1 = vcmask 64512   ;;  %v206_v13 = vmov 1.0  }
   0x2   :  { %v17_v1 = vshrl.u32 %v16_v0, 7  ;;  %v19_v2 = vand.u32 127, %v16_v0  ;;  %v13_v14 = vld [vmem:[%s238_s0 + $0x8] sm:$0xff]  ;;  %v12_v15 = vld [vmem:[%s238_s0] sm:$0xff]  ;;  %s207_s0 = smov [#allocation2]  }
   0x3   :  { %v120_v16 = vmul.f32 1.442695, %v13_v14  ;;  %v118_v17 = vmul.f32 1.442695, %v12_v15  ;;  %s154_s16 = sshll.u32 %s207_s0, 4  ;;  %s155_s16 = int_to_ptr.vmem [resolvable:$true] %s154_s16 }
   0x4   :  { %v20_v5 = vmul.u32 16, %v17_v1  ;;  %v22_v6 = vadd.s32 1, %v17_v1  ;;  %v28_v7 = vmul.u32 16, %v19_v2  ;;  %v115_v20 = vcvt.s32.f32 %v19_v2  ;;  %s184_s17 = scalar_lea.vmem %s155_s16, 16  ;;  %s188_s18 = scalar_lea.vmem %s155_s16, 32 }
   0x5   :  { %176 = vpow2.f32 %v120_v16  ;;  %p185_p0 = scmp.ne.s32.totalorder %s155_s16, %s184_s17  ;;  %p189_p1 = scmp.lt.s32.totalorder %s155_s16, %s155_s16 }
   0x6   :  { %vm21_vm0 = vcmp.ge.s32.totalorder %v19_v2, %v20_v5  ;;  %v23_v8 = vmul.u32 16, %v22_v6  ;;  %v29_v9 = vadd.s32 %v28_v7, %v14_v3  ;;  %v30_v10 = vadd.s32 %v28_v7, %v15_v4  ;;  %p190_p2 = scmp.lt.s32.totalorder %s188_s18, %s184_s17 }
   0x7   :  { %178 = vpow2.f32 %v118_v17 }
   0x8   :  { %vm24_vm2 = vcmp.lt.s32.totalorder %v19_v2, %v23_v8  ;;  %v31_v11 = vcvt.s32.f32 %v29_v9  ;;  %v32_v12 = vcvt.s32.f32 %v30_v10  ;;  %p191_p3 = por %p190_p2, %p189_p1 }
   0x9   :  { %vm25_vm3 = vmand %vm21_vm0, %vm24_vm2 }
   0xa   :  { %169 = vmatprep.subr.msk.mxu0 %vm25_vm3, %v206_v13  ;;  %171 = vmatprep.mubr.msk.f32.mxu0 %vm33_vm1, %v31_v11  ;;  %p192_p4 = pnand %p191_p3, %p185_p0 }
   0xb   :  { %170 = vmatpush3.msk.msra.mxu0 %vm25_vm3, %v206_v13 }
   0xc   :  { %172 = vmatmul.mubr.msk.f32.vlgmr.msra.gmra.mxu0 %vm33_vm1, %v32_v12 }
  0x12   :  { %v177_v18 = vpop.eup %176 }
  0x13   :  { %v123_v21 = vsub.f32 1.0, %v177_v18 }
  0x14   :  { %v179_v19 = vpop.eup %178 }
  0x15   :  { %v122_v23 = vsub.f32 1.0, %v179_v19 }
  0xcc   :  { %v173_v22 = vpop.f32.mrf.mxu0 }
  0xcd   :  { %vm117_vm4 = vcmp.eq.f32.partialorder %v115_v20, %v173_v22 }
  0xce   :  { %v125_v24 = vsel %vm117_vm4, %v177_v18, %v123_v21  ;;  %v106_v25 = vpop.f32.mrf.mxu0 }
  0xcf   :  { %v131_v26 = vmax.f32 %v125_v24, 1e-08  ;;  %vm116_vm5 = vcmp.eq.f32.partialorder %v115_v20, %v106_v25  ;;  %v127_v30 = vsub.f32 1.0, %v125_v24 }
  0xd0   :  { %v124_v27 = vsel %vm116_vm5, %v179_v19, %v122_v23 }
  0xd1   :  { %180 = vlog2.f32 %v131_v26  ;;  %v130_v28 = vmax.f32 %v124_v27, 1e-08  ;;  %v126_v32 = vsub.f32 1.0, %v124_v27  ;;  %v129_v36 = vmul.f32 %v127_v30, %v127_v30 }
  0xd3   :  { %182 = vlog2.f32 %v130_v28  ;;  %v128_v37 = vmul.f32 %v126_v32, %v126_v32 }
  0xde   :  { %v181_v29 = vpop.eup %180 }
  0xdf   :  { %v135_v31 = vmul.f32 0.6931472, %v181_v29 }
  0xe0   :  { %v183_v33 = vpop.eup %182 }
  0xe1   :  { %v137_v34 = vsub.f32 0.0, %v135_v31  ;;  %v133_v35 = vmul.f32 0.6931472, %v183_v33 }
  0xe3   :  { %v136_v38 = vsub.f32 0.0, %v133_v35  ;;  %v139_v39 = vmul.f32 %v137_v34, %v129_v36 }
  0xe5   :  { %v138_v40 = vmul.f32 %v136_v38, %v128_v37 }
  0xe7   :  { %v140_v41 = vadd.f32 %v139_v39, %v138_v40 }
  0xe9   :  { %v141_v42 = vrot.slane %v140_v41, 4 }
  0xeb   :  { %v142_v43 = vadd.f32 %v141_v42, %v140_v41 }
  0xed   :  { %v143_v44 = vrot.slane %v142_v43, 2 }
  0xef   :  { %v144_v45 = vadd.f32 %v143_v44, %v142_v43 }
  0xf1   :  { %v145_v46 = vrot.slane %v144_v45, 1 }
  0xf3   :  { %v146_v47 = vadd.f32 %v145_v46, %v144_v45 }
  0xf5   :  { %147 = vst [vmem:[#allocation2] sm:$0x1] %v146_v47 }
  0xf6   :  { %195 = shalt.err (!%p192_p4)
}
  0xf7   :  { %157 = dma.vmem_to_hbm [thread:$0]  %s155_s16, 16, %s240_s2, [#allocation3]  }
  0xf8   :  { %204 = dma.done.wait [#allocation3], 16  }
  0xf9   :  { %205 = vsyncadd [#allocation3], 4294967280 }
  0xfa   :  { %161 = vsyncpa [#allocation3], 1 }

</bundles_post_ra>
